<compile_context>
chip_gen: v6e
topology: v6e:2x2x1
jax: 0.10.0
libtpu: 0.0.40
codegen_flags: <defaults>
</compile_context>

<pallas_src>
import functools

import numpy as np
import jax
import jax.numpy as jnp
from jax import lax
from jax.experimental import pallas as pl
from jax.experimental.pallas import tpu as pltpu


# ----------------------------------------------------------------------------
# Tiling helpers
# ----------------------------------------------------------------------------
def _round_up(x, m):
    return ((x + m - 1) // m) * m


def _pick_tk(din_padded, max_tk=2048):
    """Largest multiple of 128 that divides din_padded and is <= max_tk."""
    best = 128
    t = 128
    top = min(max_tk, din_padded)
    while t <= top:
        if din_padded % t == 0:
            best = t
        t += 128
    return best


# ----------------------------------------------------------------------------
# Fused kernel: z1 = x1 @ W, z2 = x2 @ W accumulated over K tiles, then the
# spectral contrastive loss D(z1, z2, mu) on the final grid step.
# ----------------------------------------------------------------------------
def _spectral_fused_kernel(x1_ref, x2_ref, w_ref, out_ref, acc_ref, *, mu):
    k = pl.program_id(0)

    @pl.when(k == 0)
    def _init():
        acc_ref[...] = jnp.zeros_like(acc_ref)

    # K-tile partial products on the MXU, f32 accumulation in VMEM scratch.
    w = w_ref[...]
    acc_ref[0] += jnp.dot(x1_ref[...], w, preferred_element_type=jnp.float32)
    acc_ref[1] += jnp.dot(x2_ref[...], w, preferred_element_type=jnp.float32)

    @pl.when(k == pl.num_programs(0) - 1)
    def _finalize():
        sqrt_mu = float(np.sqrt(mu))

        z1 = acc_ref[0]   # (B, E) f32
        z2 = acc_ref[1]   # (B, E) f32
        B = z1.shape[0]

        # Row-wise clip of each embedding to the sqrt(mu) ball.
        # scale = min(1, sqrt(mu)/||z||); equivalent to the mask/F.normalize
        # formulation (eps folded into the rsqrt argument).
        ss1 = jnp.sum(z1 * z1, axis=1, keepdims=True)
        ss2 = jnp.sum(z2 * z2, axis=1, keepdims=True)
        s1 = jnp.minimum(1.0, sqrt_mu * lax.rsqrt(ss1 + 1e-24))
        s2 = jnp.minimum(1.0, sqrt_mu * lax.rsqrt(ss2 + 1e-24))
        z1c = z1 * s1
        z2c = z2 * s2

        # Per-row dot products: reused for part1 and as diag(z1c @ z2c.T).
        rowdot = jnp.sum(z1c * z2c, axis=1, keepdims=True)  # (B, 1)
        # part1 = -2 * mean(z1c * z2c) * E == -2 * sum(rowdot) / B
        part1 = -2.0 * jnp.sum(rowdot) / B

        # Gram matrix without an explicit transpose: contract last dims.
        gram = lax.dot_general(
            z1c, z2c, (((1,), (1,)), ((), ())),
            preferred_element_type=jnp.float32,
        )
        sq = gram * gram
        # off-diagonal sum = total - diagonal; diag(gram) == rowdot.
        off_sum = jnp.sum(sq) - jnp.sum(rowdot * rowdot)
        # mean over B*B entries, rescaled by B/(B-1)  ==  off_sum / (B*(B-1))
        part2 = off_sum / (B * (B - 1))

        out_ref[0] = part1
        out_ref[1] = part2


# ----------------------------------------------------------------------------
# Spectral module forward (backbone -> identity projector -> D), fully fused.
# ----------------------------------------------------------------------------
def spectral_forward(x1, x2, w_backbone, mu=1.0,
                     compute_dtype=jnp.bfloat16, tk=None):
    B = x1.shape[0]
    assert B >= 2, "part2 divides by B*(B-1); need batch >= 2"
    Din, E = w_backbone.shape

    x1f = x1.reshape(B, -1)
    x2f = x2.reshape(B, -1)
    assert x1f.shape[1] == Din and x2f.shape[1] == Din

    # Zero-pad K to a multiple of 128 so the (8,128) block constraint holds
    # and the K-tiled pipeline is preserved (zero rows/cols contribute 0).
    Din_pad = _round_up(Din, 128)
    if Din_pad != Din:
        pad = Din_pad - Din
        x1f = jnp.pad(x1f, ((0, 0), (0, pad)))
        x2f = jnp.pad(x2f, ((0, 0), (0, pad)))
        w = jnp.pad(w_backbone, ((0, pad), (0, 0)))
    else:
        w = w_backbone

    x1f = x1f.astype(compute_dtype)
    x2f = x2f.astype(compute_dtype)
    w = w.astype(compute_dtype)

    if tk is None:
        tk = _pick_tk(Din_pad)
    assert Din_pad % tk == 0 and tk % 128 == 0, (Din_pad, tk)
    grid = (Din_pad // tk,)

    # Explicit VMEM budget: double-buffered x1/x2/W tiles + f32 accumulator.
    itemsize = jnp.dtype(compute_dtype).itemsize
    needed = (2 * 2 * B * tk * itemsize        # x1 + x2 tiles, double-buffered
              + 2 * tk * E * itemsize          # W tile, double-buffered
              + 2 * B * E * 4)                 # persistent f32 accumulator
    vmem_limit = int(min(100 * 1024 * 1024,
                         max(2 * needed, 32 * 1024 * 1024)))

    kernel = functools.partial(_spectral_fused_kernel, mu=float(mu))
    parts = pl.pallas_call(
        kernel,
        out_shape=jax.ShapeDtypeStruct((2,), jnp.float32),
        grid_spec=pltpu.PrefetchScalarGridSpec(
            num_scalar_prefetch=0,
            grid=grid,
            in_specs=[
                pl.BlockSpec((B, tk), lambda k: (0, k)),
                pl.BlockSpec((B, tk), lambda k: (0, k)),
                pl.BlockSpec((tk, E), lambda k: (k, 0)),
            ],
            out_specs=pl.BlockSpec(memory_space=pltpu.MemorySpace.SMEM),
            scratch_shapes=[pltpu.VMEM((2, B, E), jnp.float32)],
        ),
        compiler_params=pltpu.CompilerParams(
            dimension_semantics=("arbitrary",),
            vmem_limit_bytes=vmem_limit,
        ),
    )(x1f, x2f, w)

    part1 = parts[0]
    part2 = parts[1]
    loss = (part1 + part2) / mu
    return {"loss": loss, "d_dict": {"part1": part1 / mu, "part2": part2 / mu}}


# ----------------------------------------------------------------------------
# Pure-JAX reference for verification (mirrors the PyTorch module exactly).
# ----------------------------------------------------------------------------
def _ref_forward(x1, x2, w, mu=1.0, compute_dtype=jnp.float32):
    B = x1.shape[0]
    z1 = jnp.dot(x1.reshape(B, -1).astype(compute_dtype),
                 w.astype(compute_dtype), preferred_element_type=jnp.float32)
    z2 = jnp.dot(x2.reshape(B, -1).astype(compute_dtype),
                 w.astype(compute_dtype), preferred_element_type=jnp.float32)
    sqrt_mu = np.sqrt(mu)

    def clip(zz):
        n = jnp.linalg.norm(zz, axis=1, keepdims=True)
        m = (n < sqrt_mu).astype(jnp.float32)
        return m * zz + (1 - m) * (zz / jnp.maximum(n, 1e-12)) * sqrt_mu

    z1, z2 = clip(z1), clip(z2)
    part1 = -2.0 * jnp.mean(z1 * z2) * z1.shape[1]
    sq = (z1 @ z2.T) ** 2
    off = sq - jnp.diag(jnp.diag(sq))
    part2 = jnp.mean(off) * B / (B - 1)
    return (part1 + part2) / mu, part1 / mu, part2 / mu


if __name__ == "__main__":
    # Small deterministic example: B=8, C=4, H=W=16, emb_dim=128, mu=1.0
    B, C, H, W = 8, 4, 16, 16
    emb_dim = 128
    mu = 1.0

    key = jax.random.PRNGKey(0)
    k1, k2, kw = jax.random.split(key, 3)
    x1 = jax.random.normal(k1, (B, C, H, W), dtype=jnp.float32)
    x2 = jax.random.normal(k2, (B, C, H, W), dtype=jnp.float32)
    # Deterministic backbone weight (flattened NCHW -> emb_dim)
    w_backbone = jax.random.normal(kw, (C * H * W, emb_dim), dtype=jnp.float32) * 0.02

    ref_loss, ref_p1, ref_p2 = _ref_forward(x1, x2, w_backbone, mu=mu)

    # --- run 1: f32 operands, auto K tile (tight tolerance) ------------------
    out = spectral_forward(x1, x2, w_backbone, mu=mu, compute_dtype=jnp.float32)
    jax.block_until_ready(out["loss"])
    assert np.allclose(float(out["loss"]), float(ref_loss), rtol=1e-4, atol=1e-5)
    assert np.allclose(float(out["d_dict"]["part1"]), float(ref_p1), rtol=1e-4, atol=1e-5)
    assert np.allclose(float(out["d_dict"]["part2"]), float(ref_p2), rtol=1e-4, atol=1e-5)

    # --- run 2: f32, forced multi-step K grid (exercises the accumulator) ----
    out2 = spectral_forward(x1, x2, w_backbone, mu=mu,
                            compute_dtype=jnp.float32, tk=256)
    jax.block_until_ready(out2["loss"])
    assert np.allclose(float(out2["loss"]), float(ref_loss), rtol=1e-4, atol=1e-5)
    assert np.allclose(float(out2["d_dict"]["part1"]), float(ref_p1), rtol=1e-4, atol=1e-5)
    assert np.allclose(float(out2["d_dict"]["part2"]), float(ref_p2), rtol=1e-4, atol=1e-5)

    # --- run 3: default bf16 MXU operands (f32 accumulation), looser tol -----
    # NOTE: operands are cast to bf16 before the matmul; this diverges from an
    # f32 PyTorch reference at ~1e-2 relative error (accumulation stays f32).
    out3 = spectral_forward(x1, x2, w_backbone, mu=mu)
    jax.block_until_ready(out3["loss"])
    ref_loss_bf, ref_p1_bf, ref_p2_bf = _ref_forward(
        x1, x2, w_backbone, mu=mu, compute_dtype=jnp.bfloat16)
    assert np.allclose(float(out3["loss"]), float(ref_loss_bf), rtol=2e-2, atol=2e-3)
    assert np.allclose(float(out3["d_dict"]["part1"]), float(ref_p1_bf), rtol=2e-2, atol=2e-3)
    assert np.allclose(float(out3["d_dict"]["part2"]), float(ref_p2_bf), rtol=2e-2, atol=2e-3)

    # --- run 4: non-multiple-of-128 Din (zero-padding path) + multi-step K ---
    Cp, Hp, Wp = 3, 10, 10  # Din = 300 -> padded to 384
    kx1, kx2, kwp = jax.random.split(jax.random.PRNGKey(1), 3)
    x1p = jax.random.normal(kx1, (B, Cp, Hp, Wp), dtype=jnp.float32)
    x2p = jax.random.normal(kx2, (B, Cp, Hp, Wp), dtype=jnp.float32)
    wp = jax.random.normal(kwp, (Cp * Hp * Wp, emb_dim), dtype=jnp.float32) * 0.02
    out4 = spectral_forward(x1p, x2p, wp, mu=mu, compute_dtype=jnp.float32, tk=128)
    jax.block_until_ready(out4["loss"])
    ref_loss_p, ref_p1_p, ref_p2_p = _ref_forward(x1p, x2p, wp, mu=mu)
    assert np.allclose(float(out4["loss"]), float(ref_loss_p), rtol=1e-4, atol=1e-5)
    assert np.allclose(float(out4["d_dict"]["part1"]), float(ref_p1_p), rtol=1e-4, atol=1e-5)
    assert np.allclose(float(out4["d_dict"]["part2"]), float(ref_p2_p), rtol=1e-4, atol=1e-5)

    print("KERNEL_OK")
</pallas_src>

<mosaic_0001>
module attributes {stable_mosaic.version = 11 : i64} {
  func.func @_spectral_fused_kernel(%arg0: i32, %arg1: memref<8x1024xf32, #tpu.memory_space<vmem>>, %arg2: memref<8x1024xf32, #tpu.memory_space<vmem>>, %arg3: memref<1024x128xf32, #tpu.memory_space<vmem>>, %arg4: memref<2xf32, #tpu.memory_space<smem>>, %arg5: memref<2x8x128xf32, #tpu.memory_space<vmem>>) attributes {dimension_semantics = [#tpu.dimension_semantics<arbitrary>], iteration_bounds = array<i64: 1>, scalar_prefetch = 0 : i64, scratch_operands = 1 : i64, tpu.core_type = #tpu.core_type<tc>, window_params = [{transform_indices = @transform_0, window_bounds = array<i64: 8, 1024>}, {transform_indices = @transform_1, window_bounds = array<i64: 8, 1024>}, {transform_indices = @transform_2, window_bounds = array<i64: 1024, 128>}, {transform_indices = @transform_3, window_bounds = array<i64: 2>}]} {
    %c0_i32 = arith.constant 0 : i32
    %0 = arith.cmpi eq, %arg0, %c0_i32 : i32
    %1 = arith.extui %0 : i1 to i32
    %c0_i32_0 = arith.constant 0 : i32
    %2 = arith.cmpi ne, %1, %c0_i32_0 : i32
    scf.if %2 {
      %cst_20 = arith.constant 0.000000e+00 : f32
      %23 = vector.broadcast %cst_20 : f32 to vector<2x8x128xf32>
      %c0_21 = arith.constant 0 : index
      %c0_22 = arith.constant 0 : index
      %c0_23 = arith.constant 0 : index
      %24 = vector.load %arg5[%c0_21, %c0_22, %c0_23] : memref<2x8x128xf32, #tpu.memory_space<vmem>>, vector<2x8x128xf32>
      tpu.vector_store %arg5[%c0_21, %c0_22, %c0_23], %23 {strides = array<i32>} : memref<2x8x128xf32, #tpu.memory_space<vmem>>, vector<2x8x128xf32>,
    } else {
    }
    %c0 = arith.constant 0 : index
    %c0_1 = arith.constant 0 : index
    %3 = vector.load %arg3[%c0, %c0_1] : memref<1024x128xf32, #tpu.memory_space<vmem>>, vector<1024x128xf32>
    %c0_2 = arith.constant 0 : index
    %c0_3 = arith.constant 0 : index
    %c0_4 = arith.constant 0 : index
    %4 = vector.load %arg5[%c0_2, %c0_3, %c0_4] : memref<2x8x128xf32, #tpu.memory_space<vmem>>, vector<1x8x128xf32>
    %5 = vector.shape_cast %4 : vector<1x8x128xf32> to vector<8x128xf32>
    %c0_5 = arith.constant 0 : index
    %c0_6 = arith.constant 0 : index
    %6 = vector.load %arg1[%c0_5, %c0_6] : memref<8x1024xf32, #tpu.memory_space<vmem>>, vector<8x1024xf32>
    %cst = arith.constant dense<0.000000e+00> : vector<8x128xf32>
    %7 = tpu.matmul %6, %3, %cst {dimension_numbers = #tpu.dot_dimension_numbers<[1], [0], [0], [1], [0, 0, 1, 1], [], []>} : vector<8x1024xf32>, vector<1024x128xf32>, vector<8x128xf32> -> vector<8x128xf32>
    %8 = arith.addf %5, %7 : vector<8x128xf32>
    %c0_7 = arith.constant 0 : index
    %c0_8 = arith.constant 0 : index
    %c0_9 = arith.constant 0 : index
    %9 = vector.load %arg5[%c0_7, %c0_8, %c0_9] : memref<2x8x128xf32, #tpu.memory_space<vmem>>, vector<1x8x128xf32>
    %10 = vector.shape_cast %9 : vector<1x8x128xf32> to vector<8x128xf32>
    %11 = vector.shape_cast %8 : vector<8x128xf32> to vector<1x8x128xf32>
    tpu.vector_store %arg5[%c0_7, %c0_8, %c0_9], %11 {strides = array<i32>} : memref<2x8x128xf32, #tpu.memory_space<vmem>>, vector<1x8x128xf32>,
    %c1 = arith.constant 1 : index
    %c0_10 = arith.constant 0 : index
    %c0_11 = arith.constant 0 : index
    %12 = vector.load %arg5[%c1, %c0_10, %c0_11] : memref<2x8x128xf32, #tpu.memory_space<vmem>>, vector<1x8x128xf32>
    %13 = vector.shape_cast %12 : vector<1x8x128xf32> to vector<8x128xf32>
    %c0_12 = arith.constant 0 : index
    %c0_13 = arith.constant 0 : index
    %14 = vector.load %arg2[%c0_12, %c0_13] : memref<8x1024xf32, #tpu.memory_space<vmem>>, vector<8x1024xf32>
    %cst_14 = arith.constant dense<0.000000e+00> : vector<8x128xf32>
    %15 = tpu.matmul %14, %3, %cst_14 {dimension_numbers = #tpu.dot_dimension_numbers<[1], [0], [0], [1], [0, 0, 1, 1], [], []>} : vector<8x1024xf32>, vector<1024x128xf32>, vector<8x128xf32> -> vector<8x128xf32>
    %16 = arith.addf %13, %15 : vector<8x128xf32>
    %c1_15 = arith.constant 1 : index
    %c0_16 = arith.constant 0 : index
    %c0_17 = arith.constant 0 : index
    %17 = vector.load %arg5[%c1_15, %c0_16, %c0_17] : memref<2x8x128xf32, #tpu.memory_space<vmem>>, vector<1x8x128xf32>
    %18 = vector.shape_cast %17 : vector<1x8x128xf32> to vector<8x128xf32>
    %19 = vector.shape_cast %16 : vector<8x128xf32> to vector<1x8x128xf32>
    tpu.vector_store %arg5[%c1_15, %c0_16, %c0_17], %19 {strides = array<i32>} : memref<2x8x128xf32, #tpu.memory_space<vmem>>, vector<1x8x128xf32>,
    %c0_i32_18 = arith.constant 0 : i32
    %20 = arith.cmpi eq, %arg0, %c0_i32_18 : i32
    %21 = arith.extui %20 : i1 to i32
    %c0_i32_19 = arith.constant 0 : i32
    %22 = arith.cmpi ne, %21, %c0_i32_19 : i32
    scf.if %22 {
      %c0_20 = arith.constant 0 : index
      %c0_21 = arith.constant 0 : index
      %c0_22 = arith.constant 0 : index
      %23 = vector.load %arg5[%c0_20, %c0_21, %c0_22] : memref<2x8x128xf32, #tpu.memory_space<vmem>>, vector<1x8x128xf32>
      %24 = vector.shape_cast %23 : vector<1x8x128xf32> to vector<8x128xf32>
      %c1_23 = arith.constant 1 : index
      %c0_24 = arith.constant 0 : index
      %c0_25 = arith.constant 0 : index
      %25 = vector.load %arg5[%c1_23, %c0_24, %c0_25] : memref<2x8x128xf32, #tpu.memory_space<vmem>>, vector<1x8x128xf32>
      %26 = vector.shape_cast %25 : vector<1x8x128xf32> to vector<8x128xf32>
      %27 = arith.mulf %24, %24 : vector<8x128xf32>
      %cst_26 = arith.constant dense<0.000000e+00> : vector<8xf32>
      %28 = vector.multi_reduction <add>, %27, %cst_26 [1] : vector<8x128xf32> to vector<8xf32>
      %29 = vector.shape_cast %28 : vector<8xf32> to vector<8x1xf32>
      %30 = arith.mulf %26, %26 : vector<8x128xf32>
      %cst_27 = arith.constant dense<0.000000e+00> : vector<8xf32>
      %31 = vector.multi_reduction <add>, %30, %cst_27 [1] : vector<8x128xf32> to vector<8xf32>
      %32 = vector.shape_cast %31 : vector<8xf32> to vector<8x1xf32>
      %cst_28 = arith.constant 1.000000e-24 : f32
      %33 = vector.broadcast %cst_28 : f32 to vector<8x1xf32>
      %34 = arith.addf %29, %33 : vector<8x1xf32>
      %35 = math.rsqrt %34 : vector<8x1xf32>
      %cst_29 = arith.constant 1.000000e+00 : f32
      %36 = vector.broadcast %cst_29 : f32 to vector<8x1xf32>
      %37 = arith.mulf %36, %35 : vector<8x1xf32>
      %cst_30 = arith.constant 1.000000e+00 : f32
      %38 = vector.broadcast %cst_30 : f32 to vector<8x1xf32>
      %39 = arith.minimumf %38, %37 : vector<8x1xf32>
      %cst_31 = arith.constant 1.000000e-24 : f32
      %40 = vector.broadcast %cst_31 : f32 to vector<8x1xf32>
      %41 = arith.addf %32, %40 : vector<8x1xf32>
      %42 = math.rsqrt %41 : vector<8x1xf32>
      %cst_32 = arith.constant 1.000000e+00 : f32
      %43 = vector.broadcast %cst_32 : f32 to vector<8x1xf32>
      %44 = arith.mulf %43, %42 : vector<8x1xf32>
      %cst_33 = arith.constant 1.000000e+00 : f32
      %45 = vector.broadcast %cst_33 : f32 to vector<8x1xf32>
      %46 = arith.minimumf %45, %44 : vector<8x1xf32>
      %47 = vector.broadcast %39 : vector<8x1xf32> to vector<8x128xf32>
      %48 = arith.mulf %24, %47 : vector<8x128xf32>
      %49 = vector.broadcast %46 : vector<8x1xf32> to vector<8x128xf32>
      %50 = arith.mulf %26, %49 : vector<8x128xf32>
      %51 = arith.mulf %48, %50 : vector<8x128xf32>
      %cst_34 = arith.constant dense<0.000000e+00> : vector<8xf32>
      %52 = vector.multi_reduction <add>, %51, %cst_34 [1] : vector<8x128xf32> to vector<8xf32>
      %53 = vector.shape_cast %52 : vector<8xf32> to vector<8x1xf32>
      %54 = vector.shape_cast %53 : vector<8x1xf32> to vector<1x8x1xf32>
      %cst_35 = arith.constant dense<0.000000e+00> : vector<1xf32>
      %55 = vector.multi_reduction <add>, %54, %cst_35 [1, 2] : vector<1x8x1xf32> to vector<1xf32>
      %56 = vector.shape_cast %55 : vector<1xf32> to vector<1x1x1xf32>
      %57 = vector.extract %56[0, 0, 0] : f32 from vector<1x1x1xf32>
      %cst_36 = arith.constant -2.000000e+00 : f32
      %58 = arith.mulf %cst_36, %57 : f32
      %cst_37 = arith.constant 8.000000e+00 : f32
      %59 = arith.divf %58, %cst_37 : f32
      %cst_38 = arith.constant dense<0.000000e+00> : vector<8x8xf32>
      %60 = tpu.matmul %48, %50, %cst_38 {dimension_numbers = #tpu.dot_dimension_numbers<[1], [1], [0], [0], [0, 0, 1, 0], [], []>} : vector<8x128xf32>, vector<8x128xf32>, vector<8x8xf32> -> vector<8x8xf32>
      %61 = arith.mulf %60, %60 : vector<8x8xf32>
      %62 = vector.shape_cast %61 : vector<8x8xf32> to vector<1x8x8xf32>
      %cst_39 = arith.constant dense<0.000000e+00> : vector<1xf32>
      %63 = vector.multi_reduction <add>, %62, %cst_39 [1, 2] : vector<1x8x8xf32> to vector<1xf32>
      %64 = vector.shape_cast %63 : vector<1xf32> to vector<1x1x1xf32>
      %65 = vector.extract %64[0, 0, 0] : f32 from vector<1x1x1xf32>
      %66 = arith.mulf %53, %53 : vector<8x1xf32>
      %67 = vector.shape_cast %66 : vector<8x1xf32> to vector<1x8x1xf32>
      %cst_40 = arith.constant dense<0.000000e+00> : vector<1xf32>
      %68 = vector.multi_reduction <add>, %67, %cst_40 [1, 2] : vector<1x8x1xf32> to vector<1xf32>
      %69 = vector.shape_cast %68 : vector<1xf32> to vector<1x1x1xf32>
      %70 = vector.extract %69[0, 0, 0] : f32 from vector<1x1x1xf32>
      %71 = arith.subf %65, %70 : f32
      %cst_41 = arith.constant 5.600000e+01 : f32
      %72 = arith.divf %71, %cst_41 : f32
      %c0_42 = arith.constant 0 : index
      %73 = memref.load %arg4[%c0_42] : memref<2xf32, #tpu.memory_space<smem>>
      memref.store %59, %arg4[%c0_42] : memref<2xf32, #tpu.memory_space<smem>>
      %c1_43 = arith.constant 1 : index
      %74 = memref.load %arg4[%c1_43] : memref<2xf32, #tpu.memory_space<smem>>
      memref.store %72, %arg4[%c1_43] : memref<2xf32, #tpu.memory_space<smem>>
    } else {
    }
    return
  }
  func.func @transform_0(%arg0: i32) -> (i32, i32) {
    %c0_i32 = arith.constant 0 : i32
    %c0_i32_0 = arith.constant 0 : i32
    return %c0_i32, %arg0 : i32, i32
  }
  func.func @transform_1(%arg0: i32) -> (i32, i32) {
    %c0_i32 = arith.constant 0 : i32
    %c0_i32_0 = arith.constant 0 : i32
    return %c0_i32, %arg0 : i32, i32
  }
  func.func @transform_2(%arg0: i32) -> (i32, i32) {
    %c0_i32 = arith.constant 0 : i32
    %c0_i32_0 = arith.constant 0 : i32
    return %arg0, %c0_i32 : i32, i32
  }
  func.func @transform_3(%arg0: i32) -> i32 {
    %c0_i32 = arith.constant 0 : i32
    %c0_i32_0 = arith.constant 0 : i32
    return %c0_i32 : i32
  }
}

</mosaic_0001>

<bundles_post_ra>
// kernel: tpu_custom_call.1
= control target key start
LH: loop header
LB: loop body
LE: loop exit
PB: predicated region body
PF: predicated region fallthrough
CT: control target
= control target key end

     0   :  { %8 = vsyncpa [#allocation4], 0  ;;  %s1853_s0 = inlined_call_operand.hbm [shape: f32[8,1024], index: 0, kind: input, shape index: {}]   ;;  %s1854_s1 = inlined_call_operand.hbm [shape: f32[8,1024], index: 1, kind: input, shape index: {}]   ;;  %s1855_s2 = inlined_call_operand.hbm [shape: f32[1024,128], index: 2, kind: input, shape index: {}]   ;;  %s1856_s3 = inlined_call_operand.hbm [shape: f32[2], index: 3, kind: output, shape index: {}]  }
   0x1   :  { %9 = vsyncpa [#allocation7], 0 }
   0x2   :  { %10 = vsyncpa [#allocation5], 0  ;;  %s1301_s12 = smov [#allocation6]   ;;  %s1302_s14 = smov [#allocation3]  }
   0x3   :  { %s27_s13 = sshll.u32 %s1301_s12, 4  ;;  %s17_s15 = sshll.u32 %s1302_s14, 4  ;;  %s28_s13 = int_to_ptr.vmem [resolvable:$true] %s27_s13  ;;  %s18_s15 = int_to_ptr.vmem [resolvable:$true] %s17_s15 }
   0x4   :  { %s1235_s16 = scalar_lea.vmem %s28_s13, 1024  ;;  %p1240_p1 = scmp.lt.s32.totalorder %s28_s13, %s28_s13 }
   0x5   :  { %p1236_p0 = scmp.ne.s32.totalorder %s28_s13, %s1235_s16  ;;  %p1241_p2 = scmp.lt.s32.totalorder %s1235_s16, %s1235_s16 }
   0x7   :  { %p1242_p3 = por %p1241_p2, %p1240_p1 }
   0x9   :  { %p1243_p4 = pnand %p1242_p3, %p1236_p0 }
   0xb   :  { %1246 = shalt.err (!%p1243_p4)
}
   0xc   :  { %30 = dma.hbm_to_vmem [thread:$0]  %s1854_s1, 1024, %s28_s13, [#allocation7]  }
   0xd   :  { %s1255_s19 = scalar_lea.vmem %s18_s15, 1024  ;;  %p1260_p6 = scmp.lt.s32.totalorder %s18_s15, %s18_s15 }
   0xe   :  { %p1256_p5 = scmp.ne.s32.totalorder %s18_s15, %s1255_s19  ;;  %p1261_p7 = scmp.lt.s32.totalorder %s1255_s19, %s1255_s19 }
  0x10   :  { %p1262_p8 = por %p1261_p7, %p1260_p6 }
  0x12   :  { %p1263_p9 = pnand %p1262_p8, %p1256_p5 }
  0x14   :  { %1266 = shalt.err (!%p1263_p9)
}
  0x15   :  { %20 = dma.hbm_to_vmem [thread:$0]  %s1853_s0, 1024, %s18_s15, [#allocation4]  }
  0x16   :  { %s1303_s22 = smov [#allocation8]  }
  0x17   :  { %s36_s23 = sshll.u32 %s1303_s22, 4  ;;  %s37_s23 = int_to_ptr.vmem [resolvable:$true] %s36_s23 }
  0x18   :  { %s1275_s24 = scalar_lea.vmem %s37_s23, 16384  ;;  %p1280_p11 = scmp.lt.s32.totalorder %s37_s23, %s37_s23 }
  0x19   :  { %p1276_p10 = scmp.ne.s32.totalorder %s37_s23, %s1275_s24  ;;  %p1281_p12 = scmp.lt.s32.totalorder %s1275_s24, %s1275_s24 }
  0x1b   :  { %p1282_p13 = por %p1281_p12, %p1280_p11 }
  0x1d   :  { %p1283_p0 = pnand %p1282_p13, %p1276_p10 }
  0x1f   :  { %1286 = shalt.err (!%p1283_p0)
}
  0x20   :  { %s1304_s1 = smov 128   ;;  %s1305_s25 = smov 8  }
  0x21   :  { %42 = dma.hbm_to_vmem [thread:$0]  %s1855_s2, 16384, %s37_s23, [#allocation7], %s1304_s1, %s1304_s1, %s1305_s25  }
  0x22   :  { %1295 = dma.done.wait [#allocation4], 1024  }
  0x23   :  { %1296 = vsyncadd [#allocation4], 4294966272 }
  0x24   :  { %1297 = dma.done.wait [#allocation7], 17408  }
  0x25   :  { %1298 = vsyncadd [#allocation7], 4294949888  ;;  %v1338_v0 = vld [vmem:[#allocation8 + $0xf8] sm:$0xff]  ;;  %v1348_v4 = vld [vmem:[#allocation8 + $0xf0] sm:$0xff]  ;;  %vm1307_vm0 = vmmov 0   ;;  %vm791_vm1 = vcmask 7168  }
  0x26   :  { %v1340_v1 = vld [vmem:[#allocation8 + $0x1f8] sm:$0xff]  ;;  %922 = vmatprep.subr.mxu0 %v1338_v0  ;;  %v1350_v5 = vld [vmem:[#allocation8 + $0x1f0] sm:$0xff]  ;;  %v1358_v8 = vld [vmem:[#allocation8 + $0xe8] sm:$0xff]  ;;  %vm877_vm2 = vcmask 64512   ;;  %s1308_s6 = smov [#allocation9]  }
  0x27   :  { %v1342_v2 = vld [vmem:[#allocation8 + $0x78] sm:$0xff]  ;;  %957 = vmatprep.subr.mxu1 %v1340_v1  ;;  %v1354_v6 = vld [vmem:[#allocation8 + $0x70] sm:$0xff]  ;;  %v1362_v9 = vld [vmem:[#allocation8 + $0x1e8] sm:$0xff] }
  0x28   :  { %v1346_v3 = vld [vmem:[#allocation8 + $0x178] sm:$0xff]  ;;  %923 = vmatpush3.msra.mxu0 %v1342_v2  ;;  %v1356_v7 = vld [vmem:[#allocation8 + $0x170] sm:$0xff]  ;;  %v1364_v10 = vld [vmem:[#allocation8 + $0x68] sm:$0xff] }
  0x29   :  { %958 = vmatpush3.msra.mxu1 %v1346_v3  ;;  %924 = vmatprep.subr.mxu0 %v1348_v4  ;;  %v1366_v11 = vld [vmem:[#allocation8 + $0x168] sm:$0xff]  ;;  %v1370_v12 = vld [vmem:[#allocation8 + $0xe0] sm:$0xff]  ;;  %v1382_v16 = vld [vmem:[#allocation8 + $0xd8] sm:$0xff] }
  0x2a   :  { %959 = vmatprep.subr.mxu1 %v1350_v5  ;;  %925 = vmatpush3.msra.mxu0 %v1354_v6  ;;  %v1372_v13 = vld [vmem:[#allocation8 + $0x1e0] sm:$0xff]  ;;  %v1384_v17 = vld [vmem:[#allocation8 + $0x1d8] sm:$0xff]  ;;  %v1394_v20 = vld [vmem:[#allocation8 + $0xd0] sm:$0xff] }
  0x2b   :  { %960 = vmatpush3.msra.mxu1 %v1356_v7  ;;  %926 = vmatprep.subr.mxu0 %v1358_v8  ;;  %v1376_v14 = vld [vmem:[#allocation8 + $0x60] sm:$0xff]  ;;  %v1388_v18 = vld [vmem:[#allocation8 + $0x58] sm:$0xff]  ;;  %v1396_v21 = vld [vmem:[#allocation8 + $0x1d0] sm:$0xff] }
  0x2c   :  { %961 = vmatprep.subr.mxu1 %v1362_v9  ;;  %v1378_v15 = vld [vmem:[#allocation8 + $0x160] sm:$0xff]  ;;  %927 = vmatpush3.msra.mxu0 %v1364_v10  ;;  %v1390_v19 = vld [vmem:[#allocation8 + $0x158] sm:$0xff]  ;;  %v1400_v22 = vld [vmem:[#allocation8 + $0x50] sm:$0xff] }
  0x2d   :  { %962 = vmatpush3.msra.mxu1 %v1366_v11  ;;  %928 = vmatprep.subr.mxu0 %v1370_v12  ;;  %v1402_v23 = vld [vmem:[#allocation8 + $0x150] sm:$0xff]  ;;  %v1406_v24 = vld [vmem:[#allocation8 + $0xc8] sm:$0xff]  ;;  %v1418_v28 = vld [vmem:[#allocation8 + $0xc0] sm:$0xff] }
  0x2e   :  { %963 = vmatprep.subr.mxu1 %v1372_v13  ;;  %929 = vmatpush3.msra.mxu0 %v1376_v14  ;;  %v1408_v25 = vld [vmem:[#allocation8 + $0x1c8] sm:$0xff]  ;;  %v1420_v29 = vld [vmem:[#allocation8 + $0x1c0] sm:$0xff]  ;;  %v1430_v32 = vld [vmem:[#allocation8 + $0xb8] sm:$0xff] }
  0x2f   :  { %964 = vmatpush3.msra.mxu1 %v1378_v15  ;;  %930 = vmatprep.subr.mxu0 %v1382_v16  ;;  %v1412_v26 = vld [vmem:[#allocation8 + $0x48] sm:$0xff]  ;;  %v1424_v30 = vld [vmem:[#allocation8 + $0x40] sm:$0xff]  ;;  %v1432_v33 = vld [vmem:[#allocation8 + $0x1b8] sm:$0xff] }
  0x30   :  { %965 = vmatprep.subr.mxu1 %v1384_v17  ;;  %931 = vmatpush3.msra.mxu0 %v1388_v18  ;;  %v1414_v27 = vld [vmem:[#allocation8 + $0x148] sm:$0xff]  ;;  %v1426_v31 = vld [vmem:[#allocation8 + $0x140] sm:$0xff]  ;;  %v1436_v34 = vld [vmem:[#allocation8 + $0x38] sm:$0xff] }
  0x31   :  { %966 = vmatpush3.msra.mxu1 %v1390_v19  ;;  %932 = vmatprep.subr.mxu0 %v1394_v20  ;;  %v1438_v35 = vld [vmem:[#allocation8 + $0x138] sm:$0xff]  ;;  %v1442_v36 = vld [vmem:[#allocation8 + $0xb0] sm:$0xff]  ;;  %v1454_v40 = vld [vmem:[#allocation8 + $0xa8] sm:$0xff] }
  0x32   :  { %967 = vmatprep.subr.mxu1 %v1396_v21  ;;  %933 = vmatpush3.msra.mxu0 %v1400_v22  ;;  %v1444_v37 = vld [vmem:[#allocation8 + $0x1b0] sm:$0xff]  ;;  %v1456_v41 = vld [vmem:[#allocation8 + $0x1a8] sm:$0xff]  ;;  %v1466_v44 = vld [vmem:[#allocation8 + $0xa0] sm:$0xff] }
  0x33   :  { %968 = vmatpush3.msra.mxu1 %v1402_v23  ;;  %934 = vmatprep.subr.mxu0 %v1406_v24  ;;  %v1448_v38 = vld [vmem:[#allocation8 + $0x30] sm:$0xff]  ;;  %v1460_v42 = vld [vmem:[#allocation8 + $0x28] sm:$0xff]  ;;  %v1468_v45 = vld [vmem:[#allocation8 + $0x1a0] sm:$0xff] }
  0x34   :  { %969 = vmatprep.subr.mxu1 %v1408_v25  ;;  %935 = vmatpush3.msra.mxu0 %v1412_v26  ;;  %v1450_v39 = vld [vmem:[#allocation8 + $0x130] sm:$0xff]  ;;  %v1462_v43 = vld [vmem:[#allocation8 + $0x128] sm:$0xff]  ;;  %v1472_v46 = vld [vmem:[#allocation8 + $0x20] sm:$0xff] }
  0x35   :  { %970 = vmatpush3.msra.mxu1 %v1414_v27  ;;  %936 = vmatprep.subr.mxu0 %v1418_v28  ;;  %v1474_v47 = vld [vmem:[#allocation8 + $0x120] sm:$0xff]  ;;  %v1478_v48 = vld [vmem:[#allocation8 + $0x98] sm:$0xff]  ;;  %v1490_v52 = vld [vmem:[#allocation8 + $0x90] sm:$0xff] }
  0x36   :  { %971 = vmatprep.subr.mxu1 %v1420_v29  ;;  %937 = vmatpush3.msra.mxu0 %v1424_v30  ;;  %v1480_v49 = vld [vmem:[#allocation8 + $0x198] sm:$0xff]  ;;  %1925 = vst [vmem:[#allocation13_spill] sm:$0xff] %v1490_v52  ;;  %v1492_v53 = vld [vmem:[#allocation8 + $0x190] sm:$0xff]  ;;  %v1502_v56 = vld [vmem:[#allocation8 + $0x88] sm:$0xff] }
  0x37   :  { %972 = vmatpush3.msra.mxu1 %v1426_v31  ;;  %938 = vmatprep.subr.mxu0 %v1430_v32  ;;  %v1484_v50 = vld [vmem:[#allocation8 + $0x18] sm:$0xff]  ;;  %1926 = vst [vmem:[#allocation14_spill] sm:$0xff] %v1492_v53  ;;  %v1496_v54 = vld [vmem:[#allocation8 + $0x10] sm:$0xff]  ;;  %1929 = vst [vmem:[#allocation17_spill] sm:$0xff] %v1502_v56 }
  0x38   :  { %973 = vmatprep.subr.mxu1 %v1432_v33  ;;  %939 = vmatpush3.msra.mxu0 %v1436_v34  ;;  %v1486_v51 = vld [vmem:[#allocation8 + $0x118] sm:$0xff]  ;;  %1927 = vst [vmem:[#allocation15_spill] sm:$0xff] %v1496_v54  ;;  %v1498_v55 = vld [vmem:[#allocation8 + $0x110] sm:$0xff]  ;;  %v1504_v57 = vld [vmem:[#allocation8 + $0x188] sm:$0xff] }
  0x39   :  { %974 = vmatpush3.msra.mxu1 %v1438_v35  ;;  %940 = vmatprep.subr.mxu0 %v1442_v36  ;;  %1928 = vst [vmem:[#allocation16_spill] sm:$0xff] %v1498_v55  ;;  %1930 = vst [vmem:[#allocation18_spill] sm:$0xff] %v1504_v57  ;;  %v1508_v58 = vld [vmem:[#allocation8 + $0x8] sm:$0xff]  ;;  %v1514_v60 = vld [vmem:[#allocation8 + $0x80] sm:$0xff] }
  0x3a   :  { %975 = vmatprep.subr.mxu1 %v1444_v37  ;;  %941 = vmatpush3.msra.mxu0 %v1448_v38  ;;  %1931 = vst [vmem:[#allocation19_spill] sm:$0xff] %v1508_v58  ;;  %v1510_v59 = vld [vmem:[#allocation8 + $0x108] sm:$0xff]  ;;  %1933 = vst [vmem:[#allocation21_spill] sm:$0xff] %v1514_v60  ;;  %v1516_v61 = vld [vmem:[#allocation8 + $0x180] sm:$0xff] }
  0x3b   :  { %976 = vmatpush3.msra.mxu1 %v1450_v39  ;;  %942 = vmatprep.subr.mxu0 %v1454_v40  ;;  %1932 = vst [vmem:[#allocation20_spill] sm:$0xff] %v1510_v59  ;;  %1934 = vst [vmem:[#allocation22_spill] sm:$0xff] %v1516_v61  ;;  %v1520_v62 = vld [vmem:[#allocation8] sm:$0xff]  ;;  %v188_v63 = vld [vmem:[#allocation3 + $0x8] sm:$0xff] }
  0x3c   :  { %977 = vmatprep.subr.mxu1 %v1456_v41  ;;  %943 = vmatpush3.msra.mxu0 %v1460_v42  ;;  %1935 = vst [vmem:[#allocation23_spill] sm:$0xff] %v1520_v62 }
  0x3d   :  { %978 = vmatpush3.msra.mxu1 %v1462_v43  ;;  %944 = vmatprep.subr.mxu0 %v1466_v44 }
  0x3e   :  { %979 = vmatprep.subr.mxu1 %v1468_v45  ;;  %945 = vmatpush3.msra.mxu0 %v1472_v46 }
  0x3f   :  { %980 = vmatpush3.msra.mxu1 %v1474_v47  ;;  %946 = vmatprep.subr.mxu0 %v1478_v48 }
  0x40   :  { %981 = vmatprep.subr.mxu1 %v1480_v49  ;;  %947 = vmatpush3.msra.mxu0 %v1484_v50 }
  0x41   :  { %982 = vmatpush3.msra.mxu1 %v1486_v51  ;;  %948 = vmatprep.subr.mxu0 %v1490_v52  ;;  %v189_v52 = vld [vmem:[#allocation3 + $0x10] sm:$0xff] }
  0x42   :  { %983 = vmatprep.subr.mxu1 %v1492_v53  ;;  %949 = vmatpush3.msra.mxu0 %v1496_v54  ;;  %v1524_v53 = vld [vmem:[#allocation8 + $0x100] sm:$0xff]  ;;  %v190_v54 = vld [vmem:[#allocation3 + $0x18] sm:$0xff] }
  0x43   :  { %984 = vmatpush3.msra.mxu1 %v1498_v55  ;;  %950 = vmatprep.subr.mxu0 %v1502_v56  ;;  %v187_v55 = vld [vmem:[#allocation3] sm:$0xff]  ;;  %v1531_v56 = vld [vmem:[#allocation8 + $0x3f8] sm:$0xff] }
  0x44   :  { %985 = vmatprep.subr.mxu1 %v1504_v57  ;;  %951 = vmatpush3.msra.mxu0 %v1508_v58  ;;  %v1529_v57 = vld [vmem:[#allocation8 + $0x2f8] sm:$0xff]  ;;  %1937 = vst [vmem:[#allocation25_spill] sm:$0xff] %v1531_v56 }
  0x45   :  { %986 = vmatpush3.msra.mxu1 %v1510_v59  ;;  %952 = vmatprep.subr.mxu0 %v1514_v60  ;;  %1936 = vst [vmem:[#allocation24_spill] sm:$0xff] %v1529_v57  ;;  %v1534_v59 = vld [vmem:[#allocation8 + $0x278] sm:$0xff]  ;;  %v1538_v60 = vld [vmem:[#allocation8 + $0x2f0] sm:$0xff] }
  0x46   :  { %987 = vmatprep.subr.mxu1 %v1516_v61  ;;  %953 = vmatpush3.msra.mxu0 %v1520_v62  ;;  %1938 = vst [vmem:[#allocation26_spill] sm:$0xff] %v1534_v59  ;;  %v1536_v58 = vld [vmem:[#allocation8 + $0x378] sm:$0xff]  ;;  %1940 = vst [vmem:[#allocation28_spill] sm:$0xff] %v1538_v60  ;;  %v1540_v61 = vld [vmem:[#allocation8 + $0x3f0] sm:$0xff] }
  0x47   :  { %259 = vmatprep.mubr.f32.mxu0 %v188_v63  ;;  %988 = vmatpush3.msra.mxu1 %v1524_v53  ;;  %1939 = vst [vmem:[#allocation27_spill] sm:$0xff] %v1536_v58  ;;  %1941 = vst [vmem:[#allocation29_spill] sm:$0xff] %v1540_v61  ;;  %v1544_v63 = vld [vmem:[#allocation8 + $0x270] sm:$0xff] }
  0x48   :  { %329 = vmatprep.mubr.f32.mxu1 %v190_v54  ;;  %260 = vmatmul.mubr.f32.vlgmr.msra.gmra.mxu0 %v187_v55  ;;  %1942 = vst [vmem:[#allocation30_spill] sm:$0xff] %v1544_v63  ;;  %v1546_v62 = vld [vmem:[#allocation8 + $0x370] sm:$0xff]  ;;  %v1550_v54 = vld [vmem:[#allocation8 + $0x2e8] sm:$0xff] }
  0x49   :  { %330 = vmatmul.mubr.f32.vlgmr.msra.gmra.mxu1 %v189_v52  ;;  %992 = vmatprep.subr.mxu0 %v1529_v57  ;;  %1943 = vst [vmem:[#allocation31_spill] sm:$0xff] %v1546_v62  ;;  %1944 = vst [vmem:[#allocation32_spill] sm:$0xff] %v1550_v54  ;;  %v1552_v55 = vld [vmem:[#allocation8 + $0x3e8] sm:$0xff] }
  0x4a   :  { %1027 = vmatprep.subr.mxu1 %v1531_v56  ;;  %993 = vmatpush3.msra.mxu0 %v1534_v59  ;;  %1945 = vst [vmem:[#allocation33_spill] sm:$0xff] %v1552_v55  ;;  %v1556_v52 = vld [vmem:[#allocation8 + $0x268] sm:$0xff]  ;;  %v1562_v56 = vld [vmem:[#allocation8 + $0x2e0] sm:$0xff] }
  0x4b   :  { %1028 = vmatpush3.msra.mxu1 %v1536_v58  ;;  %994 = vmatprep.subr.mxu0 %v1538_v60  ;;  %1946 = vst [vmem:[#allocation34_spill] sm:$0xff] %v1556_v52  ;;  %v1558_v57 = vld [vmem:[#allocation8 + $0x368] sm:$0xff]  ;;  %1948 = vst [vmem:[#allocation36_spill] sm:$0xff] %v1562_v56  ;;  %v1564_v59 = vld [vmem:[#allocation8 + $0x3e0] sm:$0xff] }
  0x4c   :  { %1029 = vmatprep.subr.mxu1 %v1540_v61  ;;  %1947 = vst [vmem:[#allocation35_spill] sm:$0xff] %v1558_v57  ;;  %995 = vmatpush3.msra.mxu0 %v1544_v63  ;;  %1949 = vst [vmem:[#allocation37_spill] sm:$0xff] %v1564_v59  ;;  %v1568_v58 = vld [vmem:[#allocation8 + $0x260] sm:$0xff]  ;;  %v1574_v61 = vld [vmem:[#allocation8 + $0x2d8] sm:$0xff] }
  0x4d   :  { %1030 = vmatpush3.msra.mxu1 %v1546_v62  ;;  %996 = vmatprep.subr.mxu0 %v1550_v54  ;;  %1950 = vst [vmem:[#allocation38_spill] sm:$0xff] %v1568_v58  ;;  %v1570_v60 = vld [vmem:[#allocation8 + $0x360] sm:$0xff]  ;;  %1952 = vst [vmem:[#allocation40_spill] sm:$0xff] %v1574_v61  ;;  %v1576_v63 = vld [vmem:[#allocation8 + $0x3d8] sm:$0xff] }
  0x4e   :  { %1031 = vmatprep.subr.mxu1 %v1552_v55  ;;  %1951 = vst [vmem:[#allocation39_spill] sm:$0xff] %v1570_v60  ;;  %997 = vmatpush3.msra.mxu0 %v1556_v52  ;;  %1953 = vst [vmem:[#allocation41_spill] sm:$0xff] %v1576_v63  ;;  %v1580_v62 = vld [vmem:[#allocation8 + $0x258] sm:$0xff]  ;;  %v1586_v55 = vld [vmem:[#allocation8 + $0x2d0] sm:$0xff] }
  0x4f   :  { %1032 = vmatpush3.msra.mxu1 %v1558_v57  ;;  %998 = vmatprep.subr.mxu0 %v1562_v56  ;;  %1954 = vst [vmem:[#allocation42_spill] sm:$0xff] %v1580_v62  ;;  %v1582_v54 = vld [vmem:[#allocation8 + $0x358] sm:$0xff]  ;;  %1956 = vst [vmem:[#allocation44_spill] sm:$0xff] %v1586_v55  ;;  %v1588_v52 = vld [vmem:[#allocation8 + $0x3d0] sm:$0xff] }
  0x50   :  { %1033 = vmatprep.subr.mxu1 %v1564_v59  ;;  %1955 = vst [vmem:[#allocation43_spill] sm:$0xff] %v1582_v54  ;;  %999 = vmatpush3.msra.mxu0 %v1568_v58  ;;  %1957 = vst [vmem:[#allocation45_spill] sm:$0xff] %v1588_v52  ;;  %v1592_v57 = vld [vmem:[#allocation8 + $0x250] sm:$0xff]  ;;  %v1598_v59 = vld [vmem:[#allocation8 + $0x2c8] sm:$0xff] }
  0x51   :  { %1034 = vmatpush3.msra.mxu1 %v1570_v60  ;;  %1000 = vmatprep.subr.mxu0 %v1574_v61  ;;  %1958 = vst [vmem:[#allocation46_spill] sm:$0xff] %v1592_v57  ;;  %v1594_v56 = vld [vmem:[#allocation8 + $0x350] sm:$0xff]  ;;  %1960 = vst [vmem:[#allocation48_spill] sm:$0xff] %v1598_v59  ;;  %v1600_v58 = vld [vmem:[#allocation8 + $0x3c8] sm:$0xff] }
  0x52   :  { %1035 = vmatprep.subr.mxu1 %v1576_v63  ;;  %1959 = vst [vmem:[#allocation47_spill] sm:$0xff] %v1594_v56  ;;  %1001 = vmatpush3.msra.mxu0 %v1580_v62  ;;  %1961 = vst [vmem:[#allocation49_spill] sm:$0xff] %v1600_v58  ;;  %v1604_v60 = vld [vmem:[#allocation8 + $0x248] sm:$0xff]  ;;  %v1610_v63 = vld [vmem:[#allocation8 + $0x2c0] sm:$0xff] }
  0x53   :  { %1036 = vmatpush3.msra.mxu1 %v1582_v54  ;;  %1002 = vmatprep.subr.mxu0 %v1586_v55  ;;  %1962 = vst [vmem:[#allocation50_spill] sm:$0xff] %v1604_v60  ;;  %v1606_v61 = vld [vmem:[#allocation8 + $0x348] sm:$0xff]  ;;  %1964 = vst [vmem:[#allocation52_spill] sm:$0xff] %v1610_v63  ;;  %v1612_v62 = vld [vmem:[#allocation8 + $0x3c0] sm:$0xff] }
  0x54   :  { %1037 = vmatprep.subr.mxu1 %v1588_v52  ;;  %1963 = vst [vmem:[#allocation51_spill] sm:$0xff] %v1606_v61  ;;  %1003 = vmatpush3.msra.mxu0 %v1592_v57  ;;  %1965 = vst [vmem:[#allocation53_spill] sm:$0xff] %v1612_v62  ;;  %v1616_v54 = vld [vmem:[#allocation8 + $0x240] sm:$0xff]  ;;  %v1622_v52 = vld [vmem:[#allocation8 + $0x2b8] sm:$0xff] }
  0x55   :  { %1038 = vmatpush3.msra.mxu1 %v1594_v56  ;;  %1004 = vmatprep.subr.mxu0 %v1598_v59  ;;  %1966 = vst [vmem:[#allocation54_spill] sm:$0xff] %v1616_v54  ;;  %v1618_v55 = vld [vmem:[#allocation8 + $0x340] sm:$0xff]  ;;  %1968 = vst [vmem:[#allocation56_spill] sm:$0xff] %v1622_v52  ;;  %v1624_v57 = vld [vmem:[#allocation8 + $0x3b8] sm:$0xff] }
  0x56   :  { %1039 = vmatprep.subr.mxu1 %v1600_v58  ;;  %1967 = vst [vmem:[#allocation55_spill] sm:$0xff] %v1618_v55  ;;  %1005 = vmatpush3.msra.mxu0 %v1604_v60  ;;  %1969 = vst [vmem:[#allocation57_spill] sm:$0xff] %v1624_v57  ;;  %v1628_v56 = vld [vmem:[#allocation8 + $0x238] sm:$0xff]  ;;  %v1634_v58 = vld [vmem:[#allocation8 + $0x2b0] sm:$0xff] }
  0x57   :  { %1040 = vmatpush3.msra.mxu1 %v1606_v61  ;;  %1006 = vmatprep.subr.mxu0 %v1610_v63  ;;  %1970 = vst [vmem:[#allocation58_spill] sm:$0xff] %v1628_v56  ;;  %v1630_v59 = vld [vmem:[#allocation8 + $0x338] sm:$0xff]  ;;  %1972 = vst [vmem:[#allocation60_spill] sm:$0xff] %v1634_v58  ;;  %v1636_v60 = vld [vmem:[#allocation8 + $0x3b0] sm:$0xff] }
  0x58   :  { %1041 = vmatprep.subr.mxu1 %v1612_v62  ;;  %1971 = vst [vmem:[#allocation59_spill] sm:$0xff] %v1630_v59  ;;  %1007 = vmatpush3.msra.mxu0 %v1616_v54  ;;  %1973 = vst [vmem:[#allocation61_spill] sm:$0xff] %v1636_v60  ;;  %v1640_v61 = vld [vmem:[#allocation8 + $0x230] sm:$0xff]  ;;  %v1646_v62 = vld [vmem:[#allocation8 + $0x2a8] sm:$0xff] }
  0x59   :  { %1042 = vmatpush3.msra.mxu1 %v1618_v55  ;;  %1008 = vmatprep.subr.mxu0 %v1622_v52  ;;  %1974 = vst [vmem:[#allocation62_spill] sm:$0xff] %v1640_v61  ;;  %v1642_v63 = vld [vmem:[#allocation8 + $0x330] sm:$0xff]  ;;  %1976 = vst [vmem:[#allocation64_spill] sm:$0xff] %v1646_v62  ;;  %v1648_v54 = vld [vmem:[#allocation8 + $0x3a8] sm:$0xff] }
  0x5a   :  { %1043 = vmatprep.subr.mxu1 %v1624_v57  ;;  %1975 = vst [vmem:[#allocation63_spill] sm:$0xff] %v1642_v63  ;;  %1009 = vmatpush3.msra.mxu0 %v1628_v56  ;;  %1977 = vst [vmem:[#allocation65_spill] sm:$0xff] %v1648_v54  ;;  %v1652_v55 = vld [vmem:[#allocation8 + $0x228] sm:$0xff]  ;;  %v1658_v57 = vld [vmem:[#allocation8 + $0x2a0] sm:$0xff] }
  0x5b   :  { %1044 = vmatpush3.msra.mxu1 %v1630_v59  ;;  %1010 = vmatprep.subr.mxu0 %v1634_v58  ;;  %1978 = vst [vmem:[#allocation66_spill] sm:$0xff] %v1652_v55  ;;  %v1654_v52 = vld [vmem:[#allocation8 + $0x328] sm:$0xff]  ;;  %1980 = vst [vmem:[#allocation68_spill] sm:$0xff] %v1658_v57  ;;  %v1660_v56 = vld [vmem:[#allocation8 + $0x3a0] sm:$0xff] }
  0x5c   :  { %1045 = vmatprep.subr.mxu1 %v1636_v60  ;;  %1979 = vst [vmem:[#allocation67_spill] sm:$0xff] %v1654_v52  ;;  %1011 = vmatpush3.msra.mxu0 %v1640_v61  ;;  %1981 = vst [vmem:[#allocation69_spill] sm:$0xff] %v1660_v56  ;;  %v1664_v59 = vld [vmem:[#allocation8 + $0x220] sm:$0xff]  ;;  %v1670_v60 = vld [vmem:[#allocation8 + $0x298] sm:$0xff] }
  0x5d   :  { %1046 = vmatpush3.msra.mxu1 %v1642_v63  ;;  %1012 = vmatprep.subr.mxu0 %v1646_v62  ;;  %1982 = vst [vmem:[#allocation70_spill] sm:$0xff] %v1664_v59  ;;  %v1666_v58 = vld [vmem:[#allocation8 + $0x320] sm:$0xff]  ;;  %1984 = vst [vmem:[#allocation72_spill] sm:$0xff] %v1670_v60  ;;  %v1672_v61 = vld [vmem:[#allocation8 + $0x398] sm:$0xff] }
  0x5e   :  { %1047 = vmatprep.subr.mxu1 %v1648_v54  ;;  %1983 = vst [vmem:[#allocation71_spill] sm:$0xff] %v1666_v58  ;;  %1013 = vmatpush3.msra.mxu0 %v1652_v55  ;;  %1985 = vst [vmem:[#allocation73_spill] sm:$0xff] %v1672_v61  ;;  %v1676_v63 = vld [vmem:[#allocation8 + $0x218] sm:$0xff]  ;;  %v1682_v54 = vld [vmem:[#allocation8 + $0x290] sm:$0xff] }
  0x5f   :  { %1048 = vmatpush3.msra.mxu1 %v1654_v52  ;;  %1014 = vmatprep.subr.mxu0 %v1658_v57  ;;  %1986 = vst [vmem:[#allocation74_spill] sm:$0xff] %v1676_v63  ;;  %v1678_v62 = vld [vmem:[#allocation8 + $0x318] sm:$0xff]  ;;  %1988 = vst [vmem:[#allocation76_spill] sm:$0xff] %v1682_v54  ;;  %v1684_v55 = vld [vmem:[#allocation8 + $0x390] sm:$0xff] }
  0x60   :  { %1049 = vmatprep.subr.mxu1 %v1660_v56  ;;  %1987 = vst [vmem:[#allocation75_spill] sm:$0xff] %v1678_v62  ;;  %1015 = vmatpush3.msra.mxu0 %v1664_v59  ;;  %1989 = vst [vmem:[#allocation77_spill] sm:$0xff] %v1684_v55  ;;  %v1688_v52 = vld [vmem:[#allocation8 + $0x210] sm:$0xff]  ;;  %v1694_v56 = vld [vmem:[#allocation8 + $0x288] sm:$0xff] }
  0x61   :  { %1050 = vmatpush3.msra.mxu1 %v1666_v58  ;;  %1016 = vmatprep.subr.mxu0 %v1670_v60  ;;  %1990 = vst [vmem:[#allocation78_spill] sm:$0xff] %v1688_v52  ;;  %v1690_v57 = vld [vmem:[#allocation8 + $0x310] sm:$0xff]  ;;  %1992 = vst [vmem:[#allocation80_spill] sm:$0xff] %v1694_v56  ;;  %v1696_v59 = vld [vmem:[#allocation8 + $0x388] sm:$0xff] }
  0x62   :  { %1051 = vmatprep.subr.mxu1 %v1672_v61  ;;  %1991 = vst [vmem:[#allocation79_spill] sm:$0xff] %v1690_v57  ;;  %1017 = vmatpush3.msra.mxu0 %v1676_v63  ;;  %v1700_v58 = vld [vmem:[#allocation8 + $0x208] sm:$0xff]  ;;  %v1706_v61 = vld [vmem:[#allocation8 + $0x280] sm:$0xff] }
  0x63   :  { %1052 = vmatpush3.msra.mxu1 %v1678_v62  ;;  %1018 = vmatprep.subr.mxu0 %v1682_v54  ;;  %v1702_v60 = vld [vmem:[#allocation8 + $0x308] sm:$0xff]  ;;  %v1708_v63 = vld [vmem:[#allocation8 + $0x380] sm:$0xff] }
  0x64   :  { %1053 = vmatprep.subr.mxu1 %v1684_v55  ;;  %1019 = vmatpush3.msra.mxu0 %v1688_v52  ;;  %v1712_v62 = vld [vmem:[#allocation8 + $0x200] sm:$0xff]  ;;  %v192_v54 = vld [vmem:[#allocation3 + $0x28] sm:$0xff] }
  0x65   :  { %1054 = vmatpush3.msra.mxu1 %v1690_v57  ;;  %1020 = vmatprep.subr.mxu0 %v1694_v56  ;;  %v1716_v55 = vld [vmem:[#allocation8 + $0x300] sm:$0xff]  ;;  %v194_v57 = vld [vmem:[#allocation3 + $0x38] sm:$0xff]  ;;  %v193_v56 = vld [vmem:[#allocation3 + $0x30] sm:$0xff] }
  0x66   :  { %1055 = vmatprep.subr.mxu1 %v1696_v59  ;;  %1021 = vmatpush3.msra.mxu0 %v1700_v58  ;;  %v191_v52 = vld [vmem:[#allocation3 + $0x20] sm:$0xff] }
  0x67   :  { %1056 = vmatpush3.msra.mxu1 %v1702_v60  ;;  %1022 = vmatprep.subr.mxu0 %v1706_v61 }
  0x68   :  { %1057 = vmatprep.subr.mxu1 %v1708_v63  ;;  %1023 = vmatpush3.msra.mxu0 %v1712_v62 }
  0x69   :  { %399 = vmatprep.mubr.f32.mxu0 %v192_v54  ;;  %1058 = vmatpush3.msra.mxu1 %v1716_v55  ;;  %v2044_v54 = vld [vmem:[#allocation64_spill] sm:$0xff] }
  0x6a   :  { %400 = vmatmul.mubr.f32.vlgmr.msra.gmra.mxu0 %v191_v52  ;;  %469 = vmatprep.mubr.f32.mxu1 %v194_v57  ;;  %v2043_v57 = vld [vmem:[#allocation63_spill] sm:$0xff]  ;;  %v2045_v52 = vld [vmem:[#allocation65_spill] sm:$0xff] }
  0x6b   :  { %1062 = vmatprep.subr.mxu0 %v1338_v0  ;;  %1097 = vmatprep.subr.mxu1 %v1340_v1  ;;  %v1993_v0 = vld [vmem:[#allocation13_spill] sm:$0xff]  ;;  %v1994_v1 = vld [vmem:[#allocation14_spill] sm:$0xff] }
  0x6c   :  { %470 = vmatmul.mubr.f32.vlgmr.msra.gmra.mxu1 %v193_v56  ;;  %1063 = vmatpush3.msra.mxu0 %v1342_v2  ;;  %v1995_v2 = vld [vmem:[#allocation15_spill] sm:$0xff]  ;;  %v2042_v56 = vld [vmem:[#allocation62_spill] sm:$0xff] }
  0x6d   :  { %1098 = vmatpush3.msra.mxu1 %v1346_v3  ;;  %1064 = vmatprep.subr.mxu0 %v1348_v4  ;;  %v1996_v3 = vld [vmem:[#allocation16_spill] sm:$0xff]  ;;  %v1997_v4 = vld [vmem:[#allocation17_spill] sm:$0xff] }
  0x6e   :  { %1099 = vmatprep.subr.mxu1 %v1350_v5  ;;  %1065 = vmatpush3.msra.mxu0 %v1354_v6  ;;  %v1998_v5 = vld [vmem:[#allocation18_spill] sm:$0xff] }
  0x6f   :  { %1100 = vmatpush3.msra.mxu1 %v1356_v7  ;;  %1066 = vmatprep.subr.mxu0 %v1358_v8  ;;  %v480_v6 = vld [vmem:[#allocation6 + $0x8] sm:$0xff]  ;;  %v1999_v7 = vld [vmem:[#allocation19_spill] sm:$0xff]  ;;  %v2000_v8 = vld [vmem:[#allocation20_spill] sm:$0xff] }
  0x70   :  { %1101 = vmatprep.subr.mxu1 %v1362_v9  ;;  %1067 = vmatpush3.msra.mxu0 %v1364_v10  ;;  %v482_v9 = vld [vmem:[#allocation6 + $0x18] sm:$0xff]  ;;  %v2001_v10 = vld [vmem:[#allocation21_spill] sm:$0xff] }
  0x71   :  { %1102 = vmatpush3.msra.mxu1 %v1366_v11  ;;  %1068 = vmatprep.subr.mxu0 %v1370_v12  ;;  %v2002_v11 = vld [vmem:[#allocation22_spill] sm:$0xff]  ;;  %v479_v12 = vld [vmem:[#allocation6] sm:$0xff] }
  0x72   :  { %1103 = vmatprep.subr.mxu1 %v1372_v13  ;;  %1069 = vmatpush3.msra.mxu0 %v1376_v14  ;;  %v481_v13 = vld [vmem:[#allocation6 + $0x10] sm:$0xff] }
  0x73   :  { %1104 = vmatpush3.msra.mxu1 %v1378_v15  ;;  %1070 = vmatprep.subr.mxu0 %v1382_v16  ;;  %v2003_v14 = vld [vmem:[#allocation23_spill] sm:$0xff]  ;;  %v2004_v15 = vld [vmem:[#allocation24_spill] sm:$0xff]  ;;  %v2005_v16 = vld [vmem:[#allocation25_spill] sm:$0xff] }
  0x74   :  { %1105 = vmatprep.subr.mxu1 %v1384_v17  ;;  %1071 = vmatpush3.msra.mxu0 %v1388_v18  ;;  %v2006_v17 = vld [vmem:[#allocation26_spill] sm:$0xff]  ;;  %v2007_v18 = vld [vmem:[#allocation27_spill] sm:$0xff] }
  0x75   :  { %1106 = vmatpush3.msra.mxu1 %v1390_v19  ;;  %1072 = vmatprep.subr.mxu0 %v1394_v20  ;;  %v2008_v19 = vld [vmem:[#allocation28_spill] sm:$0xff]  ;;  %v2009_v20 = vld [vmem:[#allocation29_spill] sm:$0xff] }
  0x76   :  { %1107 = vmatprep.subr.mxu1 %v1396_v21  ;;  %1073 = vmatpush3.msra.mxu0 %v1400_v22  ;;  %v2010_v21 = vld [vmem:[#allocation30_spill] sm:$0xff]  ;;  %v2011_v22 = vld [vmem:[#allocation31_spill] sm:$0xff] }
  0x77   :  { %1108 = vmatpush3.msra.mxu1 %v1402_v23  ;;  %1074 = vmatprep.subr.mxu0 %v1406_v24  ;;  %v2012_v23 = vld [vmem:[#allocation32_spill] sm:$0xff]  ;;  %v2013_v24 = vld [vmem:[#allocation33_spill] sm:$0xff] }
  0x78   :  { %1109 = vmatprep.subr.mxu1 %v1408_v25  ;;  %1075 = vmatpush3.msra.mxu0 %v1412_v26  ;;  %v2014_v25 = vld [vmem:[#allocation34_spill] sm:$0xff]  ;;  %v2015_v26 = vld [vmem:[#allocation35_spill] sm:$0xff] }
  0x79   :  { %1110 = vmatpush3.msra.mxu1 %v1414_v27  ;;  %1076 = vmatprep.subr.mxu0 %v1418_v28  ;;  %v2016_v27 = vld [vmem:[#allocation36_spill] sm:$0xff]  ;;  %v2017_v28 = vld [vmem:[#allocation37_spill] sm:$0xff] }
  0x7a   :  { %1111 = vmatprep.subr.mxu1 %v1420_v29  ;;  %1077 = vmatpush3.msra.mxu0 %v1424_v30  ;;  %v2018_v29 = vld [vmem:[#allocation38_spill] sm:$0xff]  ;;  %v2019_v30 = vld [vmem:[#allocation39_spill] sm:$0xff] }
  0x7b   :  { %1112 = vmatpush3.msra.mxu1 %v1426_v31  ;;  %1078 = vmatprep.subr.mxu0 %v1430_v32  ;;  %v2020_v31 = vld [vmem:[#allocation40_spill] sm:$0xff]  ;;  %v2021_v32 = vld [vmem:[#allocation41_spill] sm:$0xff] }
  0x7c   :  { %1113 = vmatprep.subr.mxu1 %v1432_v33  ;;  %1079 = vmatpush3.msra.mxu0 %v1436_v34  ;;  %v2022_v33 = vld [vmem:[#allocation42_spill] sm:$0xff]  ;;  %v2023_v34 = vld [vmem:[#allocation43_spill] sm:$0xff] }
  0x7d   :  { %1114 = vmatpush3.msra.mxu1 %v1438_v35  ;;  %1080 = vmatprep.subr.mxu0 %v1442_v36  ;;  %v2024_v35 = vld [vmem:[#allocation44_spill] sm:$0xff]  ;;  %v2025_v36 = vld [vmem:[#allocation45_spill] sm:$0xff] }
  0x7e   :  { %1115 = vmatprep.subr.mxu1 %v1444_v37  ;;  %1081 = vmatpush3.msra.mxu0 %v1448_v38  ;;  %v2026_v37 = vld [vmem:[#allocation46_spill] sm:$0xff]  ;;  %v2027_v38 = vld [vmem:[#allocation47_spill] sm:$0xff] }
  0x7f   :  { %1116 = vmatpush3.msra.mxu1 %v1450_v39  ;;  %1082 = vmatprep.subr.mxu0 %v1454_v40  ;;  %v2028_v39 = vld [vmem:[#allocation48_spill] sm:$0xff]  ;;  %v2029_v40 = vld [vmem:[#allocation49_spill] sm:$0xff] }
  0x80   :  { %1117 = vmatprep.subr.mxu1 %v1456_v41  ;;  %1083 = vmatpush3.msra.mxu0 %v1460_v42  ;;  %v2030_v41 = vld [vmem:[#allocation50_spill] sm:$0xff]  ;;  %v2031_v42 = vld [vmem:[#allocation51_spill] sm:$0xff] }
  0x81   :  { %1118 = vmatpush3.msra.mxu1 %v1462_v43  ;;  %1084 = vmatprep.subr.mxu0 %v1466_v44  ;;  %v2032_v43 = vld [vmem:[#allocation52_spill] sm:$0xff]  ;;  %v2033_v44 = vld [vmem:[#allocation53_spill] sm:$0xff] }
  0x82   :  { %1119 = vmatprep.subr.mxu1 %v1468_v45  ;;  %1085 = vmatpush3.msra.mxu0 %v1472_v46  ;;  %v2034_v45 = vld [vmem:[#allocation54_spill] sm:$0xff]  ;;  %v2035_v46 = vld [vmem:[#allocation55_spill] sm:$0xff] }
  0x83   :  { %1120 = vmatpush3.msra.mxu1 %v1474_v47  ;;  %1086 = vmatprep.subr.mxu0 %v1478_v48  ;;  %v2036_v47 = vld [vmem:[#allocation56_spill] sm:$0xff]  ;;  %v2037_v48 = vld [vmem:[#allocation57_spill] sm:$0xff] }
  0x84   :  { %1121 = vmatprep.subr.mxu1 %v1480_v49  ;;  %1087 = vmatpush3.msra.mxu0 %v1484_v50  ;;  %v2038_v49 = vld [vmem:[#allocation58_spill] sm:$0xff]  ;;  %v2039_v50 = vld [vmem:[#allocation59_spill] sm:$0xff] }
  0x85   :  { %1122 = vmatpush3.msra.mxu1 %v1486_v51  ;;  %1088 = vmatprep.subr.mxu0 %v1993_v0  ;;  %v2040_v51 = vld [vmem:[#allocation60_spill] sm:$0xff]  ;;  %v2046_v0 = vld [vmem:[#allocation66_spill] sm:$0xff] }
  0x86   :  { %1123 = vmatprep.subr.mxu1 %v1994_v1  ;;  %1089 = vmatpush3.msra.mxu0 %v1995_v2  ;;  %v2047_v1 = vld [vmem:[#allocation67_spill] sm:$0xff]  ;;  %v2048_v2 = vld [vmem:[#allocation68_spill] sm:$0xff] }
  0x87   :  { %1124 = vmatpush3.msra.mxu1 %v1996_v3  ;;  %1090 = vmatprep.subr.mxu0 %v1997_v4  ;;  %v2049_v3 = vld [vmem:[#allocation69_spill] sm:$0xff]  ;;  %v2050_v4 = vld [vmem:[#allocation70_spill] sm:$0xff] }
  0x88   :  { %1125 = vmatprep.subr.mxu1 %v1998_v5  ;;  %1091 = vmatpush3.msra.mxu0 %v1999_v7  ;;  %v2051_v5 = vld [vmem:[#allocation71_spill] sm:$0xff]  ;;  %v2053_v7 = vld [vmem:[#allocation73_spill] sm:$0xff] }
  0x89   :  { %1126 = vmatpush3.msra.mxu1 %v2000_v8  ;;  %1092 = vmatprep.subr.mxu0 %v2001_v10  ;;  %v2054_v8 = vld [vmem:[#allocation74_spill] sm:$0xff]  ;;  %v2056_v10 = vld [vmem:[#allocation76_spill] sm:$0xff] }
  0x8a   :  { %1127 = vmatprep.subr.mxu1 %v2002_v11  ;;  %1093 = vmatpush3.msra.mxu0 %v2003_v14  ;;  %v2057_v11 = vld [vmem:[#allocation77_spill] sm:$0xff]  ;;  %v2060_v14 = vld [vmem:[#allocation80_spill] sm:$0xff] }
  0x8b   :  { %551 = vmatprep.mubr.f32.mxu0 %v480_v6  ;;  %1128 = vmatpush3.msra.mxu1 %v1524_v53  ;;  %v2041_v53 = vld [vmem:[#allocation61_spill] sm:$0xff]  ;;  %v2052_v6 = vld [vmem:[#allocation72_spill] sm:$0xff] }
  0x8c   :  { %621 = vmatprep.mubr.f32.mxu1 %v482_v9  ;;  %552 = vmatmul.mubr.f32.vlgmr.msra.gmra.mxu0 %v479_v12  ;;  %v2055_v9 = vld [vmem:[#allocation75_spill] sm:$0xff]  ;;  %v2058_v12 = vld [vmem:[#allocation78_spill] sm:$0xff] }
  0x8d   :  { %622 = vmatmul.mubr.f32.vlgmr.msra.gmra.mxu1 %v481_v13  ;;  %1132 = vmatprep.subr.mxu0 %v2004_v15  ;;  %v2059_v13 = vld [vmem:[#allocation79_spill] sm:$0xff]  ;;  %v484_v15 = vld [vmem:[#allocation6 + $0x28] sm:$0xff] }
  0x8e   :  { %1167 = vmatprep.subr.mxu1 %v2005_v16  ;;  %1133 = vmatpush3.msra.mxu0 %v2006_v17  ;;  %v486_v16 = vld [vmem:[#allocation6 + $0x38] sm:$0xff]  ;;  %v483_v17 = vld [vmem:[#allocation6 + $0x20] sm:$0xff] }
  0x8f   :  { %1168 = vmatpush3.msra.mxu1 %v2007_v18  ;;  %1134 = vmatprep.subr.mxu0 %v2008_v19  ;;  %v485_v18 = vld [vmem:[#allocation6 + $0x30] sm:$0xff] }
  0x90   :  { %1169 = vmatprep.subr.mxu1 %v2009_v20  ;;  %1135 = vmatpush3.msra.mxu0 %v2010_v21 }
  0x91   :  { %1170 = vmatpush3.msra.mxu1 %v2011_v22  ;;  %1136 = vmatprep.subr.mxu0 %v2012_v23 }
  0x92   :  { %1171 = vmatprep.subr.mxu1 %v2013_v24  ;;  %1137 = vmatpush3.msra.mxu0 %v2014_v25 }
  0x93   :  { %1172 = vmatpush3.msra.mxu1 %v2015_v26  ;;  %1138 = vmatprep.subr.mxu0 %v2016_v27 }
  0x94   :  { %1173 = vmatprep.subr.mxu1 %v2017_v28  ;;  %1139 = vmatpush3.msra.mxu0 %v2018_v29 }
  0x95   :  { %1174 = vmatpush3.msra.mxu1 %v2019_v30  ;;  %1140 = vmatprep.subr.mxu0 %v2020_v31 }
  0x96   :  { %1175 = vmatprep.subr.mxu1 %v2021_v32  ;;  %1141 = vmatpush3.msra.mxu0 %v2022_v33 }
  0x97   :  { %1176 = vmatpush3.msra.mxu1 %v2023_v34  ;;  %1142 = vmatprep.subr.mxu0 %v2024_v35 }
  0x98   :  { %1177 = vmatprep.subr.mxu1 %v2025_v36  ;;  %1143 = vmatpush3.msra.mxu0 %v2026_v37 }
  0x99   :  { %1178 = vmatpush3.msra.mxu1 %v2027_v38  ;;  %1144 = vmatprep.subr.mxu0 %v2028_v39 }
  0x9a   :  { %1179 = vmatprep.subr.mxu1 %v2029_v40  ;;  %1145 = vmatpush3.msra.mxu0 %v2030_v41 }
  0x9b   :  { %1180 = vmatpush3.msra.mxu1 %v2031_v42  ;;  %1146 = vmatprep.subr.mxu0 %v2032_v43 }
  0x9c   :  { %1181 = vmatprep.subr.mxu1 %v2033_v44  ;;  %1147 = vmatpush3.msra.mxu0 %v2034_v45  ;;  %v1306_v44 = vmov 0.0  }
  0x9d   :  { %1182 = vmatpush3.msra.mxu1 %v2035_v46  ;;  %1148 = vmatprep.subr.mxu0 %v2036_v47 }
  0x9e   :  { %1183 = vmatprep.subr.mxu1 %v2037_v48  ;;  %1149 = vmatpush3.msra.mxu0 %v2038_v49 }
  0x9f   :  { %1184 = vmatpush3.msra.mxu1 %v2039_v50  ;;  %1150 = vmatprep.subr.mxu0 %v2040_v51 }
  0xa0   :  { %1185 = vmatprep.subr.mxu1 %v2041_v53  ;;  %1151 = vmatpush3.msra.mxu0 %v2042_v56 }
  0xa1   :  { %1186 = vmatpush3.msra.mxu1 %v2043_v57  ;;  %1152 = vmatprep.subr.mxu0 %v2044_v54 }
  0xa2   :  { %1187 = vmatprep.subr.mxu1 %v2045_v52  ;;  %1153 = vmatpush3.msra.mxu0 %v2046_v0 }
  0xa3   :  { %1188 = vmatpush3.msra.mxu1 %v2047_v1  ;;  %1154 = vmatprep.subr.mxu0 %v2048_v2 }
  0xa4   :  { %1189 = vmatprep.subr.mxu1 %v2049_v3  ;;  %1155 = vmatpush3.msra.mxu0 %v2050_v4 }
  0xa5   :  { %1190 = vmatpush3.msra.mxu1 %v2051_v5  ;;  %1156 = vmatprep.subr.mxu0 %v2052_v6 }
  0xa6   :  { %1191 = vmatprep.subr.mxu1 %v2053_v7  ;;  %1157 = vmatpush3.msra.mxu0 %v2054_v8 }
  0xa7   :  { %1192 = vmatpush3.msra.mxu1 %v2055_v9  ;;  %1158 = vmatprep.subr.mxu0 %v2056_v10 }
  0xa8   :  { %1193 = vmatprep.subr.mxu1 %v2057_v11  ;;  %1159 = vmatpush3.msra.mxu0 %v2058_v12 }
  0xa9   :  { %1194 = vmatpush3.msra.mxu1 %v2059_v13  ;;  %1160 = vmatprep.subr.mxu0 %v2060_v14 }
  0xaa   :  { %1195 = vmatprep.subr.mxu1 %v1696_v59  ;;  %1161 = vmatpush3.msra.mxu0 %v1700_v58 }
  0xab   :  { %1196 = vmatpush3.msra.mxu1 %v1702_v60  ;;  %1162 = vmatprep.subr.mxu0 %v1706_v61 }
  0xac   :  { %1197 = vmatprep.subr.mxu1 %v1708_v63  ;;  %1163 = vmatpush3.msra.mxu0 %v1712_v62 }
  0xad   :  { %691 = vmatprep.mubr.f32.mxu0 %v484_v15  ;;  %1198 = vmatpush3.msra.mxu1 %v1716_v55 }
  0xae   :  { %761 = vmatprep.mubr.f32.mxu1 %v486_v16  ;;  %692 = vmatmul.mubr.f32.vlgmr.msra.gmra.mxu0 %v483_v17 }
  0xaf   :  { %762 = vmatmul.mubr.f32.vlgmr.msra.gmra.mxu1 %v485_v18  ;;  %1204 = vmatprep.subr.mxu0 %v1306_v44 }
  0xb0   :  { %1206 = vmatprep.mubr.msk.f32.mxu0 %vm1307_vm0, %v1306_v44 }
 0x108   :  { %v954_v59 = vpop.f32.mrf.mxu0 }
 0x109   :  { %v989_v19 = vpop.f32.mrf.mxu1 }
 0x10a   :  { %v955_v58 = vpop.f32.mrf.mxu0 }
 0x10b   :  { %v990_v20 = vpop.f32.mrf.mxu1  ;;  %v956_v26 = vadd.f32 %v955_v58, %v954_v59 }
 0x10c   :  { %v991_v62 = vadd.f32 %v990_v20, %v989_v19 }
 0x10e   :  { %v332_v33 = vadd.f32 %v991_v62, %v956_v26 }
 0x12a   :  { %v1024_v60 = vpop.f32.mrf.mxu0 }
 0x12c   :  { %v1059_v21 = vpop.f32.mrf.mxu1  ;;  %v1025_v22 = vpop.f32.mrf.mxu0 }
 0x12d   :  { %v1026_v30 = vadd.f32 %v1025_v22, %v1024_v60 }
 0x12e   :  { %v1060_v61 = vpop.f32.mrf.mxu1 }
 0x12f   :  { %v402_v36 = vadd.f32 %v1026_v30, %v332_v33  ;;  %v1061_v37 = vadd.f32 %v1060_v61, %v1059_v21 }
 0x131   :  { %v472_v41 = vadd.f32 %v1061_v37, %v402_v36 }
 0x133   :  { %v774_v43 = vmul.f32 %v472_v41, %v472_v41 }
 0x14c   :  { %v1094_v23 = vpop.f32.mrf.mxu0 }
 0x14d   :  { %v1129_v63 = vpop.f32.mrf.mxu1 }
 0x14e   :  { %v1095_v24 = vpop.f32.mrf.mxu0 }
 0x14f   :  { %v1130_v25 = vpop.f32.mrf.mxu1  ;;  %v1096_v27 = vadd.f32 %v1095_v24, %v1094_v23 }
 0x150   :  { %v1131_v28 = vadd.f32 %v1130_v25, %v1129_v63 }
 0x152   :  { %v624_v34 = vadd.f32 %v1131_v28, %v1096_v27 }
 0x16e   :  { %v1164_v55 = vpop.f32.mrf.mxu0 }
 0x16f   :  { %v1199_v29 = vpop.f32.mrf.mxu1 }
 0x170   :  { %v1165_v31 = vpop.f32.mrf.mxu0 }
 0x171   :  { %v1200_v32 = vpop.f32.mrf.mxu1  ;;  %v1166_v35 = vadd.f32 %v1165_v31, %v1164_v55 }
 0x172   :  { %v1201_v39 = vadd.f32 %v1200_v32, %v1199_v29 }
 0x173   :  { %v694_v38 = vadd.f32 %v1166_v35, %v624_v34 }
 0x175   :  { %v764_v40 = vadd.f32 %v1201_v39, %v694_v38 }
 0x177   :  { %v777_v42 = vmul.f32 %v764_v40, %v764_v40 }
 0x179   :  { %778 = vadd.xlane.f32.xlu0 %v777_v42 }
 0x17d   :  { %775 = vadd.xlane.f32.xlu0 %v774_v43 }
 0x202   :  { %v779_v45 = vpop.xlane.xlu0 %778 }
 0x203   :  { %v783_v46 = vadd.f32 1e-24, %v779_v45 }
 0x205   :  { %1223 = vrsqrt.f32 %v783_v46 }
 0x206   :  { %v776_v47 = vpop.xlane.xlu0 %775 }
 0x207   :  { %v780_v48 = vadd.f32 1e-24, %v776_v47 }
 0x209   :  { %1225 = vrsqrt.f32 %v780_v48 }
 0x212   :  { %v1224_v49 = vpop.eup %1223 }
 0x213   :  { %v785_v50 = vmin.f32 %v1224_v49, 1.0 }
 0x215   :  { %v787_v51 = vmul.f32 %v785_v50, %v764_v40 }
 0x216   :  { %v1226_v53 = vpop.eup %1225 }
 0x217   :  { %v782_v56 = vmin.f32 %v1226_v53, 1.0  ;;  %1205 = vmatpush3.xpose.msra.mxu0 %v787_v51 }
 0x219   :  { %v786_v57 = vmul.f32 %v782_v56, %v472_v41 }
 0x21b   :  { %1207 = vmatmul.mubr.f32.vlgmr.msra.gmra.mxu0 %v786_v57  ;;  %v788_v54 = vmul.f32 %v787_v51, %v786_v57 }
 0x21d   :  { %789 = vadd.xlane.f32.xlu1 %v788_v54 }
 0x2a6   :  { %v790_v52 = vpop.xlane.xlu1 %789 }
 0x2a7   :  { %v888_v0 = vmul.f32 %v790_v52, %v790_v52  ;;  %v792_v1 = vsel %vm791_vm1, %v790_v52, 0.0 }
 0x2a8   :  { %793 = vadd.xlane.f32.xlu1 %v792_v1 }
 0x2a9   :  { %v889_v2 = vsel %vm791_vm1, %v888_v0, 0.0 }
 0x2ac   :  { %890 = vadd.xlane.f32.xlu1 %v889_v2 }
 0x2db   :  { %v872_v3 = vpop.f32.mrf.mxu0 }
 0x2dc   :  { %v876_v4 = vmul.f32 %v872_v3, %v872_v3 }
 0x2dd   :  { %v1208_v5 = vpop.f32.mrf.mxu0 }
 0x2de   :  { %v878_v6 = vsel %vm877_vm2, %v876_v4, 0.0 }
 0x2df   :  { %879 = vadd.xlane.f32.xlu0 %v878_v6 }
 0x331   :  { %v794_v7 = vpop.xlane.xlu1 %793 }
 0x332   :  { %v795_v8 = vrot.slane %v794_v7, 4 }
 0x334   :  { %v796_v9 = vadd.f32 %v795_v8, %v794_v7 }
 0x335   :  { %v891_v14 = vpop.xlane.xlu1 %890 }
 0x336   :  { %v797_v10 = vrot.slane %v796_v9, 2  ;;  %v892_v15 = vrot.slane %v891_v14, 4 }
 0x338   :  { %v798_v11 = vadd.f32 %v797_v10, %v796_v9  ;;  %v893_v16 = vadd.f32 %v892_v15, %v891_v14 }
 0x33a   :  { %v799_v12 = vrot.slane %v798_v11, 1  ;;  %v894_v17 = vrot.slane %v893_v16, 2 }
 0x33c   :  { %v800_v13 = vadd.f32 %v799_v12, %v798_v11  ;;  %v895_v58 = vadd.f32 %v894_v17, %v893_v16 }
 0x33e   :  { %1209 = vpush %v800_v13  ;;  %v896_v21 = vrot.slane %v895_v58, 1 }
 0x340   :  { %v897_v23 = vadd.f32 %v896_v21, %v895_v58 }
 0x368   :  { %v880_v18 = vpop.xlane.xlu0 %879 }
 0x369   :  { %v881_v59 = vrot.slane %v880_v18, 4 }
 0x36b   :  { %v882_v19 = vadd.f32 %v881_v59, %v880_v18 }
 0x36d   :  { %v883_v20 = vrot.slane %v882_v19, 2 }
 0x36f   :  { %v884_v60 = vadd.f32 %v883_v20, %v882_v19  ;;  %s1210_s0 = spop %1209 }
 0x370   :  { %s802_s2 = smul.f32 -2.0, %s1210_s0 }
 0x371   :  { %v885_v22 = vrot.slane %v884_v60, 1 }
 0x372   :  { %s805_s28 = smul.f32 0.125, %s802_s2 }
 0x373   :  { %v886_v61 = vadd.f32 %v885_v22, %v884_v60 }
 0x374   :  { %904 = sst [smem:[#allocation9]] %s805_s28 }
 0x375   :  { %1211 = vpush %v886_v61 }
 0x376   :  { %1213 = vpush %v897_v23 }
 0x3a6   :  { %s1212_s29 = spop %1211 }
 0x3a7   :  { %s1214_s30 = spop %1213 }
 0x3a8   :  { %s899_s4 = ssub.f32 %s1212_s29, %s1214_s30 }
 0x3aa   :  { %s902_s5 = smul.f32 0.017857144, %s899_s4 }
 0x3ac   :  { %906 = sst [smem:[#allocation9 + $0x1]] %s902_s5 }
 0x3ad   :  { %914 = dma.smem_to_hbm %s1308_s6, 16, %s1856_s3, [#allocation5]  }
 0x3ae   :  { %1299 = dma.done.wait [#allocation5], 16  }
 0x3af   :  { %1300 = vsyncadd [#allocation5], 4294967280 }
 0x3b0   :  { %918 = sfence }
 0x3b1   :  { %919 = vsyncpa [#allocation4], 1 }
 0x3b2   :  { %920 = vsyncpa [#allocation7], 1 }
 0x3b3   :  { %921 = vsyncpa [#allocation5], 1 }

</bundles_post_ra>
